<compile_context>
chip_gen: v7x
topology: tpu7x:2x2x1
jax: 0.10.0
libtpu: 0.0.40
codegen_flags: <defaults>
</compile_context>

<pallas_src>
import jax
import jax.numpy as jnp
import numpy as np
from jax.experimental import pallas as pl
from jax.experimental.pallas import tpu as pltpu

_LANE = 128


def _round_up(n, m):
    return (n + m - 1) // m * m


# ----------------------------------------------------------------------------
# Pallas kernels: pure VPU broadcast-FMA epilogue (mem-bound)
# ----------------------------------------------------------------------------
def _affine_kernel(gamma_ref, beta_ref, x_ref, o_ref):
    # gamma/beta: (TB, C, 1);  x/o: (TB, C, TILE_L)
    x = x_ref[...]
    g = gamma_ref[...].astype(x.dtype)
    b = beta_ref[...].astype(x.dtype)
    o_ref[...] = ((1 + g) * x + b).astype(o_ref.dtype)


def _shift_kernel(shift_ref, x_ref, o_ref):
    x = x_ref[...]
    s = shift_ref[...].astype(x.dtype)
    o_ref[...] = (x + s).astype(o_ref.dtype)


# ----------------------------------------------------------------------------
# Generation-aware tile planning
# ----------------------------------------------------------------------------
def _plan_tiles(B, C, L_pad, itemsize):
    """Pick (TB, tile_l, vmem_limit_bytes) for an HBM-bound copy-like kernel."""
    try:
        vmem_cap = pltpu.get_tpu_info().vmem_capacity_bytes
    except Exception:
        vmem_cap = 64 << 20                      # conservative (v7x per-TC)
    usable = (vmem_cap * 3) // 4                 # headroom below physical VMEM
    target_block = min(2 << 20, usable // 6)     # ~2 MiB x-block (>=85% roofline)

    row_bytes = C * itemsize
    n128 = L_pad // _LANE

    # Largest multiple-of-128 divisor of L_pad whose (C, tile_l) strip fits.
    best = 1
    for d in range(1, n128 + 1):
        if n128 % d == 0 and d * _LANE * row_bytes <= target_block:
            best = d
    tile_l = best * _LANE

    # Block several batch rows per step while the block stays under target.
    tb = 1
    for d in range(1, B + 1):
        if B % d == 0 and d * C * tile_l * itemsize <= target_block:
            tb = d

    # Keep >= 2 grid steps so both v7x TensorCores get work.
    if (B // tb) * (L_pad // tile_l) < 2:
        if n128 >= 2:
            for d in range(n128 // 2, 0, -1):
                if n128 % d == 0:
                    tile_l = d * _LANE
                    break
        elif B >= 2:
            for d in range(B // 2, 0, -1):
                if B % d == 0:
                    tb = d
                    break

    # Explicit VMEM plan: double-buffered x in + out blocks, plus small strips.
    block_bytes = tb * C * tile_l * itemsize
    strip_bytes = tb * C * 4
    plan = 2 * (2 * block_bytes) + 2 * (2 * strip_bytes) + (2 << 20)
    vmem_limit = int(min(max(plan, 8 << 20), usable))
    return tb, tile_l, vmem_limit


# ----------------------------------------------------------------------------
# Wrapper
# ----------------------------------------------------------------------------
def feature_wise_affine(x, noise_embed, w, b, *, use_affine_level=False):
    """x: (B, C, L), noise_embed: (B, Din), w: (Dout, Din), b: (Dout,)."""
    B, C, L = x.shape
    Dout, Din = w.shape
    assert Dout == C * (2 if use_affine_level else 1), (Dout, C)
    assert noise_embed.shape == (B, Din)

    # Tiny projection done once in the wrapper (f32), off the per-tile path.
    proj = (noise_embed.astype(jnp.float32) @ w.astype(jnp.float32).T
            + b.astype(jnp.float32))                       # (B, Dout)

    # Pad L to a multiple of 128 so every store is an unmasked lane-dense vst.
    L_pad = _round_up(L, _LANE)
    x_in = jnp.pad(x, ((0, 0), (0, 0), (0, L_pad - L))) if L_pad != L else x

    itemsize = jnp.dtype(x.dtype).itemsize
    TB, tile_l, vmem_limit = _plan_tiles(B, C, L_pad, itemsize)
    grid = (B // TB, L_pad // tile_l)

    cp = pltpu.CompilerParams(
        dimension_semantics=("parallel", "parallel"),
        vmem_limit_bytes=vmem_limit)

    x_spec = pl.BlockSpec((TB, C, tile_l), lambda n, l: (n, 0, l))
    strip_spec = pl.BlockSpec((TB, C, 1), lambda n, l: (n, 0, 0))

    if use_affine_level:
        gamma = proj[:, :C].reshape(B, C, 1)               # split at wrapper level:
        beta = proj[:, C:].reshape(B, C, 1)                # no in-kernel sublane slice
        out = pl.pallas_call(
            _affine_kernel,
            out_shape=jax.ShapeDtypeStruct((B, C, L_pad), x.dtype),
            grid=grid,
            in_specs=[strip_spec, strip_spec, x_spec],
            out_specs=x_spec,
            compiler_params=cp,
        )(gamma, beta, x_in)
    else:
        shift = proj.reshape(B, C, 1)
        out = pl.pallas_call(
            _shift_kernel,
            out_shape=jax.ShapeDtypeStruct((B, C, L_pad), x.dtype),
            grid=grid,
            in_specs=[strip_spec, x_spec],
            out_specs=x_spec,
            compiler_params=cp,
        )(shift, x_in)

    return out[:, :, :L] if L_pad != L else out


# ----------------------------------------------------------------------------
# Pure-JAX reference
# ----------------------------------------------------------------------------
def feature_wise_affine_ref(x, noise_embed, w, b, use_affine_level=False):
    batch = x.shape[0]
    proj = (noise_embed.astype(jnp.float32) @ w.astype(jnp.float32).T
            + b.astype(jnp.float32)).reshape(batch, -1, 1)
    if use_affine_level:
        gamma, beta = jnp.split(proj, 2, axis=1)
        return ((1.0 + gamma) * x.astype(jnp.float32) + beta).astype(x.dtype)
    return (x.astype(jnp.float32) + proj).astype(x.dtype)


# ----------------------------------------------------------------------------
if __name__ == "__main__":
    B = 2      # batch
    DIN = 32   # in_channels (noise embedding dim)
    C = 32     # out_channels (feature channels of x)

    key = jax.random.PRNGKey(0)
    kx1, kx2, kn, kw1, kb1, kw2, kb2 = jax.random.split(key, 7)

    noise_embed = jax.random.normal(kn, (B, DIN), jnp.float32)

    # ---- use_affine_level = False : x + Linear(noise)[:, :, None] ----------
    # L not a multiple of 128 -> exercises the pad-to-lane-dense path.
    L1 = 200
    x1 = jax.random.normal(kx1, (B, C, L1), jnp.float32)
    w_add = 0.1 * jax.random.normal(kw1, (C, DIN), jnp.float32)
    b_add = 0.1 * jax.random.normal(kb1, (C,), jnp.float32)
    out_add = jax.block_until_ready(
        feature_wise_affine(x1, noise_embed, w_add, b_add,
                            use_affine_level=False))
    ref_add = feature_wise_affine_ref(x1, noise_embed, w_add, b_add,
                                      use_affine_level=False)
    assert out_add.shape == (B, C, L1), out_add.shape
    np.testing.assert_allclose(np.asarray(out_add), np.asarray(ref_add),
                               rtol=1e-5, atol=1e-5)

    # ---- use_affine_level = True : (1 + gamma) * x + beta ------------------
    L2 = 256
    x2 = jax.random.normal(kx2, (B, C, L2), jnp.float32)
    w_aff = 0.1 * jax.random.normal(kw2, (2 * C, DIN), jnp.float32)
    b_aff = 0.1 * jax.random.normal(kb2, (2 * C,), jnp.float32)
    out_aff = jax.block_until_ready(
        feature_wise_affine(x2, noise_embed, w_aff, b_aff,
                            use_affine_level=True))
    ref_aff = feature_wise_affine_ref(x2, noise_embed, w_aff, b_aff,
                                      use_affine_level=True)
    assert out_aff.shape == (B, C, L2), out_aff.shape
    np.testing.assert_allclose(np.asarray(out_aff), np.asarray(ref_aff),
                               rtol=1e-5, atol=1e-5)

    print("KERNEL_OK")
</pallas_src>

<mosaic_0001>
module attributes {stable_mosaic.version = 11 : i64} {
  func.func @_shift_kernel(%arg0: i32, %arg1: i32, %arg2: memref<2x32x1xf32, #tpu.memory_space<vmem>>, %arg3: memref<2x32x128xf32, #tpu.memory_space<vmem>>, %arg4: memref<2x32x128xf32, #tpu.memory_space<vmem>>) attributes {dimension_semantics = [#tpu.dimension_semantics<parallel>, #tpu.dimension_semantics<parallel>], iteration_bounds = array<i64: 1, 2>, scalar_prefetch = 0 : i64, scratch_operands = 0 : i64, tpu.core_type = #tpu.core_type<tc>, window_params = [{transform_indices = @transform_0, window_bounds = array<i64: 2, 32, 1>}, {transform_indices = @transform_1, window_bounds = array<i64: 2, 32, 128>}, {transform_indices = @transform_2, window_bounds = array<i64: 2, 32, 128>}]} {
    %c0 = arith.constant 0 : index
    %c0_0 = arith.constant 0 : index
    %c0_1 = arith.constant 0 : index
    %0 = vector.load %arg3[%c0, %c0_0, %c0_1] : memref<2x32x128xf32, #tpu.memory_space<vmem>>, vector<2x32x128xf32>
    %c0_2 = arith.constant 0 : index
    %c0_3 = arith.constant 0 : index
    %c0_4 = arith.constant 0 : index
    %1 = vector.load %arg2[%c0_2, %c0_3, %c0_4] : memref<2x32x1xf32, #tpu.memory_space<vmem>>, vector<2x32x1xf32>
    %2 = vector.broadcast %1 : vector<2x32x1xf32> to vector<2x32x128xf32>
    %3 = arith.addf %0, %2 : vector<2x32x128xf32>
    %c0_5 = arith.constant 0 : index
    %c0_6 = arith.constant 0 : index
    %c0_7 = arith.constant 0 : index
    %4 = vector.load %arg4[%c0_5, %c0_6, %c0_7] : memref<2x32x128xf32, #tpu.memory_space<vmem>>, vector<2x32x128xf32>
    tpu.vector_store %arg4[%c0_5, %c0_6, %c0_7], %3 {strides = array<i32>} : memref<2x32x128xf32, #tpu.memory_space<vmem>>, vector<2x32x128xf32>,
    return
  }
  func.func @transform_0(%arg0: i32, %arg1: i32) -> (i32, i32, i32) {
    %c0_i32 = arith.constant 0 : i32
    %c0_i32_0 = arith.constant 0 : i32
    %c0_i32_1 = arith.constant 0 : i32
    return %arg0, %c0_i32, %c0_i32_0 : i32, i32, i32
  }
  func.func @transform_1(%arg0: i32, %arg1: i32) -> (i32, i32, i32) {
    %c0_i32 = arith.constant 0 : i32
    %c0_i32_0 = arith.constant 0 : i32
    return %arg0, %c0_i32, %arg1 : i32, i32, i32
  }
  func.func @transform_2(%arg0: i32, %arg1: i32) -> (i32, i32, i32) {
    %c0_i32 = arith.constant 0 : i32
    %c0_i32_0 = arith.constant 0 : i32
    return %arg0, %c0_i32, %arg1 : i32, i32, i32
  }
}

</mosaic_0001>

<bundles_post_ra>
// kernel: tpu_custom_call.1
= control target key start
LH: loop header
LB: loop body
LE: loop exit
PB: predicated region body
PF: predicated region fallthrough
CT: control target
= control target key end

     0   :  { %7 = vsyncpa [#allocation3], 0  ;;  %s829_s0 = inlined_call_operand.vmem [shape: f32[2,32,1], index: 0, kind: input, shape index: {}]   ;;  %s830_s1 = inlined_call_operand.hbm [shape: f32[2,32,256], index: 1, kind: input, shape index: {}]   ;;  %s831_s2 = inlined_call_operand.hbm [shape: f32[2,32,256], index: 2, kind: output, shape index: {}]  }
   0x1   :  { %9 = vsyncpa [#allocation3 + $0x1], 0 }
   0x2   :  { %10 = vsyncpa [#allocation4], 0 }
   0x3   :  { %12 = vsyncpa [#allocation4 + $0x1], 0  ;;  %s618_s9 = smov 0   ;;  %s620_s10 = smov 0  }
   0x4   :  { %s622_s11 = smov 0   ;;  %s624_s12 = smov 0  }
   0x5   :  { %s626_s13 = smov 0   ;;  %s628_s14 = smov 0  }
   0x6 LB: > { %s395_s15 = sadd.s32 4294967295, %s592_s14   ;;  %s396_s16 = sadd.s32 4294967294, %s592_s14   ;;  %s592_s14 = sphi %s628_s14, %s18_s14   ;;  %s588_s13 = sphi %s626_s13, %s845_s13   ;;  %s584_s12 = sphi %s624_s12, %s844_s12   ;;  %s580_s11 = sphi %s622_s11, %s843_s11   ;;  %s576_s10 = sphi %s620_s10, %s842_s10   ;;  %s572_s9 = sphi %s618_s9, %s841_s9  }
   0x7   : > { %s27_s17 = sadd.s32 1, %s588_s13  ;;  %s65_s18 = sadd.s32 1, %s580_s11 }
   0x8   : > { %p28_p0 = scmp.ge.s32.totalorder %s27_s17, 2  ;;  %p72_p1 = scmp.ne.s32.totalorder %s580_s11, %s576_s10 }
   0x9   : > { %p73_p2 = scmp.eq.s32.totalorder %s592_s14, 0  ;;  %p78_p3 = scmp.ne.s32.totalorder %s576_s10, %s572_s9 }
   0xa   : > { %s847_s17 = smov (%p28_p0, %s27_s17), 0  ;;  %p79_p5 = scmp.eq.s32.totalorder %s395_s15, 0 }
   0xb   : > { %p659_p4 = por %p73_p2, %p72_p1  ;;  %s61_s20 = ssub.s32 %s588_s13, %s847_s17 }
   0xc   : > { %p104_p6 = scmp.eq.s32.totalorder %s395_s15, 1  ;;  %p63_p7 = scmp.eq.s32.totalorder %s61_s20, 0 }
   0xd   : > { %p665_p8 = por %p79_p5, %p78_p3  ;;  %p110_p10 = scmp.eq.s32.totalorder %s396_s16, 1 }
   0xe   : > { %p669_p9 = por %p104_p6, %p72_p1  ;;  %p421_p13 = scmp.lt.s32.totalorder %s592_s14, 2 }
   0xf   : > { %s674_s23 = scalar_select %p63_p7, %s580_s11, %s65_s18  }
  0x10   : > { %s835_s22 = scalar_select %p669_p9, 1, 0 }
  0x11   : > { %p676_p11 = por %p110_p10, %p78_p3  ;;  %s140_s25 = sand.u32 1, %s580_s11  }
  0x12   : > { %s400_s26 = sshll.u32 %s140_s25, 6  ;;  %s401_s27 = sshll.u32 %s588_s13, 7 }
  0x13   : > { %s836_s24 = scalar_select %p676_p11, 1, 0 }
  0x14   : > { %s687_s30 = scalar_lea.hbm %s830_s1, %s401_s27  ;;  %s144_s3 = scalar_lea.vmem [#allocation2], %s400_s26 }
  0x15   : > { %s153_s4 = sshll.u32 %s144_s3, 4  ;;  %p693_p0 = pnand %p421_p13, %p659_p4  ;;  %s689_s4 = int_to_ptr.vmem [resolvable:$true] %s153_s4 }
  0x16   : > { %s697_s6 = scalar_lea.sflag [#allocation3], %s140_s25  ;;  %s480_s7 = scalar_lea.hbm %s687_s30, 1024 }
  0x17   : > { %p481_p1 = scmp.ne.s32.totalorder %s687_s30, %s480_s7  ;;  %p482_p2 = pneg %p693_p0 }
  0x18   : > { %s485_s16 = scalar_lea.hbm %s830_s1, 2048  ;;  %p486_p4 = scmp.lt.u32.totalorder %s687_s30, %s830_s1 }
  0x19   : > { %p483_p3 = pnand %p482_p2, %p481_p1  ;;  %p487_p6 = scmp.lt.u32.totalorder %s485_s16, %s480_s7 }
  0x1a   : > { %p489_p10 = scmp.lt.u32.totalorder %s480_s7, %s687_s30 }
  0x1b   : > { %p484_p5 = pneg %p483_p3  ;;  %p488_p7 = por %p487_p6, %p486_p4 }
  0x1d   : > { %p490_p13 = por %p489_p10, %p488_p7 }
  0x1f   : > { %p491_p12 = pnand %p490_p13, %p484_p5 }
  0x21   : > { %494 = shalt.err (!%p491_p12)
}
  0x22   : > { %s495_s20 = scalar_lea.vmem %s689_s4, 1024  ;;  %s594_s25 = smov [#allocation2]  }
  0x23   : > { %p496_p1 = scmp.ne.s32.totalorder %s689_s4, %s495_s20  ;;  %s500_s26 = sshll.u32 %s594_s25, 4  ;;  %s501_s26 = int_to_ptr.vmem [resolvable:$false] %s500_s26 }
  0x24   : > { %s502_s27 = scalar_lea.vmem %s501_s26, 2048  ;;  %p503_p9 = scmp.lt.s32.totalorder %s689_s4, %s501_s26 }
  0x25   : > { %p498_p3 = pnand %p496_p1, %p482_p2  ;;  %p504_p4 = scmp.lt.s32.totalorder %s502_s27, %s495_s20 }
  0x27   : > { %p499_p11 = pneg %p498_p3  ;;  %p505_p6 = por %p504_p4, %p503_p9 }
  0x29   : > { %p506_p7 = pnand %p505_p6, %p499_p11 }
  0x2b   : > { %509 = shalt.err (!%p506_p7)
}
  0x2c   : > { %s595_s28 = smov 256   ;;  %s596_s29 = smov 128  }
  0x2d   : > { %s597_s3 = smov 8   ;;  %p402_p12 = scmp.ge.s32.totalorder %s592_s14, 1 }
  0x2e   : > { %416 = dma.hbm_to_vmem [thread:$0]  (!%p693_p0), %s687_s30, 1024, %s689_s4, %s697_s6, %s595_s28, %s596_s29, %s597_s3  }
  0x2f   : > { %p161_p2 = scmp.lt.s32.totalorder %s592_s14, 3 }
  0x31   : > { %p162_p5 = pnand %p402_p12, %p161_p2 }
  0x32   : > { %s728_s7 = sand.u32 (!%p162_p5), 1, %s576_s10  }
  0x33   : > { %165 = sbr.rel (%p162_p5) target bundleno = 219 (0xdb), region = 28  ;;  %s403_s8 = sshll.u32 (!%p162_p5), %s728_s7, 6 }
  0x34   : > { %s168_s15 = scalar_lea.sflag (!%p162_p5), [#allocation3], %s728_s7  ;;  %s734_s16 = scalar_lea.vmem (!%p162_p5), [#allocation2], %s403_s8 }
  0x3a   : > { %563 = dma.done.wait (%p665_p8), %s168_s15, 1024  }
  0x3b   : > { %565 = vsyncadd (%p665_p8), %s168_s15, 4294966272  ;;  %v598_v0 = vmov 0   ;;  %v217_v1 = vld [vmem:[%s829_s0 + $0x10] sm:$0xff]  ;;  %v215_v2 = vld [vmem:[%s829_s0] sm:$0xff]  ;;  %s197_s4 = scalar_lea.vmem [#allocation5], %s403_s8  ;;  %s406_s8 = sshll.u32 %s584_s12, 7 }
  0x3c   : > { %479 = vset.pattern.permute.xlu1 %v598_v0  ;;  %478 = vset.pattern.permute.xlu0 %v598_v0  ;;  %v218_v3 = vld [vmem:[%s829_s0 + $0x18] sm:$0xff]  ;;  %v216_v4 = vld [vmem:[%s829_s0 + $0x8] sm:$0xff]  ;;  %v219_v6 = vld [vmem:[%s829_s0 + $0x20] sm:$0xff]  ;;  %s295_s5 = sshll.u32 %s197_s4, 4  ;;  %s780_s19 = scalar_lea.hbm %s831_s2, %s406_s8  ;;  %s775_s5 = int_to_ptr.vmem [resolvable:$true] %s295_s5 }
  0x3d   : > { %235 = vperm.xlu1 %479, %v217_v1   ;;  %225 = vperm.xlu0 %478, %v215_v2   ;;  %v220_v5 = vld [vmem:[%s829_s0 + $0x28] sm:$0xff]  ;;  %v222_v7 = vld [vmem:[%s829_s0 + $0x38] sm:$0xff]  ;;  %v221_v8 = vld [vmem:[%s829_s0 + $0x30] sm:$0xff]  ;;  %s280_s12 = scalar_lea.sflag [#allocation4], %s728_s7  ;;  %p838_p9 = scmp.ne.s32.totalorder %s835_s22, 0 }
  0x3e   : > { %v209_v9 = vld [vmem:[%s734_s16 + $0x10] sm:$0xff]  ;;  %v207_v10 = vld [vmem:[%s734_s16] sm:$0xff]  ;;  %v210_v15 = vld [vmem:[%s734_s16 + $0x18] sm:$0xff]  ;;  %s599_s21 = smov [#allocation5]  }
  0x3f   : > { %v208_v16 = vld [vmem:[%s734_s16 + $0x8] sm:$0xff]  ;;  %v211_v22 = vld [vmem:[%s734_s16 + $0x20] sm:$0xff]  ;;  %v214_v27 = vld [vmem:[%s734_s16 + $0x38] sm:$0xff]  ;;  %s514_s20 = sshll.u32 %s599_s21, 4  ;;  %s515_s20 = int_to_ptr.vmem [resolvable:$false] %s514_s20 }
  0x40   : > { %v212_v21 = vld [vmem:[%s734_s16 + $0x28] sm:$0xff]  ;;  %v213_v28 = vld [vmem:[%s734_s16 + $0x30] sm:$0xff]  ;;  %s510_s16 = scalar_lea.vmem %s775_s5, 1024  ;;  %s516_s25 = scalar_lea.vmem %s515_s20, 2048 }
  0x41   : > { %240 = vperm.xlu1 %479, %v218_v3   ;;  %230 = vperm.xlu0 %478, %v216_v4   ;;  %p511_p8 = scmp.ne.s32.totalorder %s775_s5, %s510_s16  ;;  %p517_p10 = scmp.lt.s32.totalorder %s775_s5, %s515_s20 }
  0x42   : > { %p518_p13 = scmp.lt.s32.totalorder %s516_s25, %s510_s16 }
  0x43   : > { %p512_p11 = pnand %p511_p8, %p838_p9 }
  0x44   : > { %p519_p1 = por %p518_p13, %p517_p10 }
  0x45   : > { %250 = vperm.xlu1 %479, %v220_v5   ;;  %245 = vperm.xlu0 %478, %v219_v6   ;;  %p513_p0 = pneg %p512_p11 }
  0x47   : > { %p520_p3 = pnand %p519_p1, %p513_p0 }
  0x49   : > { %260 = vperm.xlu1 %479, %v222_v7   ;;  %255 = vperm.xlu0 %478, %v221_v8  }
  0xbc   : > { %v236_v11 = vpop.permute.xlu1 %235  ;;  %v226_v12 = vpop.permute.xlu0 %225 }
  0xbd   : > { %v265_v13 = vadd.f32 %v236_v11, %v209_v9  ;;  %v263_v14 = vadd.f32 %v226_v12, %v207_v10 }
  0xbf   : > { %273 = vst [vmem:[%s197_s4 + $0x10] sm:$0xff] %v265_v13  ;;  %271 = vst [vmem:[%s197_s4] sm:$0xff] %v263_v14 }
  0xc0   : > { %v241_v17 = vpop.permute.xlu1 %240  ;;  %v231_v18 = vpop.permute.xlu0 %230 }
  0xc1   : > { %v266_v19 = vadd.f32 %v241_v17, %v210_v15  ;;  %v264_v20 = vadd.f32 %v231_v18, %v208_v16 }
  0xc3   : > { %274 = vst [vmem:[%s197_s4 + $0x18] sm:$0xff] %v266_v19  ;;  %272 = vst [vmem:[%s197_s4 + $0x8] sm:$0xff] %v264_v20 }
  0xc4   : > { %v251_v23 = vpop.permute.xlu1 %250  ;;  %v246_v24 = vpop.permute.xlu0 %245 }
  0xc5   : > { %v268_v25 = vadd.f32 %v251_v23, %v212_v21  ;;  %v267_v26 = vadd.f32 %v246_v24, %v211_v22 }
  0xc7   : > { %276 = vst [vmem:[%s197_s4 + $0x28] sm:$0xff] %v268_v25  ;;  %275 = vst [vmem:[%s197_s4 + $0x20] sm:$0xff] %v267_v26 }
  0xc8   : > { %v261_v29 = vpop.permute.xlu1 %260  ;;  %v256_v30 = vpop.permute.xlu0 %255 }
  0xc9   : > { %v270_v31 = vadd.f32 %v261_v29, %v214_v27  ;;  %v269_v32 = vadd.f32 %v256_v30, %v213_v28 }
  0xcb   : > { %278 = vst [vmem:[%s197_s4 + $0x38] sm:$0xff] %v270_v31  ;;  %277 = vst [vmem:[%s197_s4 + $0x30] sm:$0xff] %v269_v32 }
  0xcc   : > { %523 = shalt.err (!%p520_p3)
}
  0xcd   : > { %s524_s26 = scalar_lea.hbm %s780_s19, 1024  ;;  %s528_s29 = scalar_lea.hbm %s831_s2, 2048 }
  0xce   : > { %p525_p4 = scmp.ne.s32.totalorder %s780_s19, %s524_s26  ;;  %p529_p12 = scmp.lt.u32.totalorder %s780_s19, %s831_s2 }
  0xcf   : > { %p530_p2 = scmp.lt.u32.totalorder %s528_s29, %s524_s26  ;;  %p532_p8 = scmp.lt.u32.totalorder %s524_s26, %s780_s19 }
  0xd0   : > { %p526_p6 = pnand %p525_p4, %p838_p9 }
  0xd1   : > { %p531_p5 = por %p530_p2, %p529_p12 }
  0xd2   : > { %p527_p7 = pneg %p526_p6 }
  0xd3   : > { %p533_p11 = por %p532_p8, %p531_p5 }
  0xd5   : > { %p534_p0 = pnand %p533_p11, %p527_p7 }
  0xd7   : > { %537 = shalt.err (!%p534_p0)
}
  0xd8   : > { %s600_s30 = smov 128   ;;  %s601_s4 = smov 256  }
  0xd9   : > { %s602_s8 = smov 8  }
  0xda   : > { %411 = dma.vmem_to_hbm [thread:$0]  (%p838_p9), %s775_s5, 1024, %s780_s19, %s280_s12, %s600_s30, %s601_s4, %s602_s8  }
  0xdb PF: > { %s310_s6 = sand.u32 1, %s572_s9   ;;  %p839_p10 = scmp.ne.s32.totalorder %s836_s24, 0 }
  0xdc   : > { %p840_p13 = scmp.ge.s32.totalorder %s592_s14, 2  ;;  %s311_s18 = scalar_lea.sflag [#allocation4], %s310_s6 }
  0xde   : > { %p418_p1 = pnand %p840_p13, %p839_p10 }
  0xe0   : > { %567 = dma.done.wait (!%p418_p1), %s311_s18, 1024  }
  0xe1   : > { %569 = vsyncadd (!%p418_p1), %s311_s18, 4294966272  ;;  %s18_s14 = sadd.s32 1, %s592_s14   ;;  %s841_s9 = smov %s576_s10 }
  0xe2   : > { %p15_p3 = scmp.ge.s32.totalorder %s18_s14, 4   ;;  %s842_s10 = smov %s580_s11 }
  0xe3   : > { %s843_s11 = smov %s674_s23  ;;  %s844_s12 = smov %s588_s13 }
  0xe4   : > { %s845_s13 = smov %s847_s17  ;;  %17 = sbr.rel (!%p15_p3) target bundleno = 6 (0x6), region = 76 }
  0xeb   :  { %316 = vsyncpa [#allocation3], 1 }
  0xec   :  { %318 = vsyncpa [#allocation3 + $0x1], 1 }
  0xed   :  { %319 = vsyncpa [#allocation4], 1 }
  0xee   :  { %321 = vsyncpa [#allocation4 + $0x1], 1 }

</bundles_post_ra>
